<compile_context>
chip_gen: v5e
topology: v5e:2x2
jax: 0.10.0
libtpu: 0.0.40
codegen_flags: <defaults>
</compile_context>

<pallas_src>
import functools

import jax
import jax.numpy as jnp
from jax.experimental import pallas as pl
from jax.experimental.pallas import tpu as pltpu


def _round_up(x: int, m: int) -> int:
    return ((x + m - 1) // m) * m


def actor_kernel(obs_ref, w1_ref, b1_ref, w2_ref, b2_ref, wl_ref, bl_ref,
                 out_ref, *, max_action: float):
    # obs arrives at real feature width in f32; cast on the VPU (cheap — the
    # kernel is HBM-bound) instead of materializing a padded bf16 copy in HBM.
    x = obs_ref[...].astype(jnp.bfloat16)

    # Hidden layer 1: Linear (bf16 operands, f32 accumulation) + bias + ReLU.
    h1 = jnp.dot(x, w1_ref[...], preferred_element_type=jnp.float32) + b1_ref[...]
    h1 = jnp.maximum(h1, 0.0).astype(jnp.bfloat16)

    # Hidden layer 2: Linear + bias + ReLU.
    h2 = jnp.dot(h1, w2_ref[...], preferred_element_type=jnp.float32) + b2_ref[...]
    h2 = jnp.maximum(h2, 0.0).astype(jnp.bfloat16)

    # Output head (`self.last`) + tanh squash; output block is only
    # action_dim lanes wide, so only real action bytes are written to HBM.
    logits = jnp.dot(h2, wl_ref[...], preferred_element_type=jnp.float32) + bl_ref[...]
    out_ref[...] = (max_action * jnp.tanh(logits)).astype(out_ref.dtype)


def pack_params(params):
    """Pad hidden to a lane-dense multiple of 128 and cast weights to bf16, ONCE.

    Call this once and reuse the result across actor_forward calls so the
    per-env-step path does no weight padding/conversion dispatches.
    """
    obs_dim, hidden_dim = params["w1"].shape
    action_dim = params["wl"].shape[1]
    hid_p = _round_up(hidden_dim, 128)

    def pad2(a, rows, cols):
        a = jnp.asarray(a, jnp.float32)
        return jnp.pad(a, ((0, rows - a.shape[0]), (0, cols - a.shape[1])))

    return {
        # Padded weight rows/cols are zero -> padded hidden units are exactly
        # ReLU(0)=0 and contribute nothing downstream, so results are unchanged.
        "w1": pad2(params["w1"], obs_dim, hid_p).astype(jnp.bfloat16),
        "b1": pad2(params["b1"], 1, hid_p),                 # biases stay f32
        "w2": pad2(params["w2"], hid_p, hid_p).astype(jnp.bfloat16),
        "b2": pad2(params["b2"], 1, hid_p),
        "wl": pad2(params["wl"], hid_p, action_dim).astype(jnp.bfloat16),
        "bl": pad2(params["bl"], 1, action_dim),
        "obs_dim": obs_dim,
        "hidden_dim": hidden_dim,
        "action_dim": action_dim,
        "hid_p": hid_p,
        "_packed": True,
    }


def actor_forward(obs, params, max_action: float = 1.0):
    """Fused Actor forward pass as a single batch-tiled Pallas TPU kernel."""
    if not params.get("_packed", False):
        params = pack_params(params)

    obs = jnp.asarray(obs, dtype=jnp.float32)
    batch, obs_dim = obs.shape
    assert obs_dim == params["obs_dim"], "obs feature width mismatch"
    action_dim = params["action_dim"]
    hid_p = params["hid_p"]

    # ---- balanced batch tiling --------------------------------------------
    # Live activation slabs per tile ~= tb*hid_p*12 B (two f32 + two bf16);
    # keep well under the 32 MiB scoped-VMEM budget (v7x: 64 MiB physical).
    tb_max = 2048 if hid_p <= 512 else 1024
    n_tiles = pl.cdiv(batch, tb_max)
    # v7x has two TensorCores: once the batch is nontrivial, force >= 2 grid
    # steps so the "parallel" batch axis actually splits across both cores.
    if n_tiles < 2 and batch >= 512:
        n_tiles = 2
    tb = _round_up(pl.cdiv(batch, n_tiles), 8)      # f32 sublane multiple
    batch_p = _round_up(batch, tb)                  # tail padding < tb rows
    grid = (batch_p // tb,)

    if batch_p != batch:
        obs = jnp.pad(obs, ((0, batch_p - batch), (0, 0)))

    kernel = functools.partial(actor_kernel, max_action=float(max_action))

    def pinned(shape):
        # Same block every grid step -> stays resident in VMEM across steps.
        return pl.BlockSpec(shape, lambda i: (0, 0))

    out = pl.pallas_call(
        kernel,
        out_shape=jax.ShapeDtypeStruct((batch_p, action_dim), jnp.float32),
        grid=grid,
        in_specs=[
            pl.BlockSpec((tb, obs_dim), lambda i: (i, 0)),   # obs tile (pipelined)
            pinned((obs_dim, hid_p)),                        # w1
            pinned((1, hid_p)),                              # b1
            pinned((hid_p, hid_p)),                          # w2
            pinned((1, hid_p)),                              # b2
            pinned((hid_p, action_dim)),                     # wl
            pinned((1, action_dim)),                         # bl
        ],
        out_specs=pl.BlockSpec((tb, action_dim), lambda i: (i, 0)),
        compiler_params=pltpu.CompilerParams(
            dimension_semantics=("parallel",),
            vmem_limit_bytes=32 * 1024 * 1024,
        ),
    )(obs, params["w1"], params["b1"], params["w2"], params["b2"],
      params["wl"], params["bl"])

    return out[:batch] if batch_p != batch else out


def init_params(key, obs_dim, hidden_dim, action_dim):
    """Deterministic synthetic init (PyTorch-Linear-style uniform bounds)."""
    def linear(k, fan_in, fan_out):
        k_w, k_b = jax.random.split(k)
        bound = 1.0 / jnp.sqrt(fan_in)
        w = jax.random.uniform(k_w, (fan_in, fan_out), jnp.float32, -bound, bound)
        b = jax.random.uniform(k_b, (1, fan_out), jnp.float32, -bound, bound)
        return w, b

    k1, k2, k3 = jax.random.split(key, 3)
    w1, b1 = linear(k1, obs_dim, hidden_dim)
    w2, b2 = linear(k2, hidden_dim, hidden_dim)
    wl, bl = linear(k3, hidden_dim, action_dim)
    return {"w1": w1, "b1": b1, "w2": w2, "b2": b2, "wl": wl, "bl": bl}


def actor_reference(obs, params, max_action: float = 1.0):
    """Pure-JAX f32 reference for the correctness check."""
    h = jnp.maximum(obs @ params["w1"] + params["b1"], 0.0)
    h = jnp.maximum(h @ params["w2"] + params["b2"], 0.0)
    return max_action * jnp.tanh(h @ params["wl"] + params["bl"])


if __name__ == "__main__":
    key = jax.random.PRNGKey(0)
    k_obs, k_params = jax.random.split(key)

    batch, obs_dim, hidden_dim, action_dim = 2, 16, 32, 8
    max_action = 1.0

    obs = jax.random.normal(k_obs, (batch, obs_dim), dtype=jnp.float32)
    params = init_params(k_params, obs_dim, hidden_dim, action_dim)
    packed = pack_params(params)          # pack weights once, reuse every call

    actions = actor_forward(obs, packed, max_action)
    actions = jax.block_until_ready(actions)

    ref = actor_reference(obs, params, max_action)
    assert actions.shape == (batch, action_dim)
    # bf16 matmul operands with f32 accumulation -> loosened tolerance.
    assert jnp.allclose(actions, ref, atol=2e-2, rtol=2e-2), (
        f"max abs err = {jnp.max(jnp.abs(actions - ref))}")

    print("KERNEL_OK")
</pallas_src>

<mosaic_0001>
module attributes {stable_mosaic.version = 11 : i64} {
  func.func @actor_kernel(%arg0: i32, %arg1: memref<8x16xf32, #tpu.memory_space<vmem>>, %arg2: memref<16x128xbf16, #tpu.memory_space<vmem>>, %arg3: memref<1x128xf32, #tpu.memory_space<vmem>>, %arg4: memref<128x128xbf16, #tpu.memory_space<vmem>>, %arg5: memref<1x128xf32, #tpu.memory_space<vmem>>, %arg6: memref<128x8xbf16, #tpu.memory_space<vmem>>, %arg7: memref<1x8xf32, #tpu.memory_space<vmem>>, %arg8: memref<8x8xf32, #tpu.memory_space<vmem>>) attributes {dimension_semantics = [#tpu.dimension_semantics<parallel>], iteration_bounds = array<i64: 1>, scalar_prefetch = 0 : i64, scratch_operands = 0 : i64, tpu.core_type = #tpu.core_type<tc>, window_params = [{transform_indices = @transform_0, window_bounds = array<i64: 8, 16>}, {pipeline_mode = #tpu.pipeline_mode<synchronous>, transform_indices = @transform_1, window_bounds = array<i64: 16, 128>}, {pipeline_mode = #tpu.pipeline_mode<synchronous>, transform_indices = @transform_2, window_bounds = array<i64: 1, 128>}, {pipeline_mode = #tpu.pipeline_mode<synchronous>, transform_indices = @transform_3, window_bounds = array<i64: 128, 128>}, {pipeline_mode = #tpu.pipeline_mode<synchronous>, transform_indices = @transform_4, window_bounds = array<i64: 1, 128>}, {pipeline_mode = #tpu.pipeline_mode<synchronous>, transform_indices = @transform_5, window_bounds = array<i64: 128, 8>}, {pipeline_mode = #tpu.pipeline_mode<synchronous>, transform_indices = @transform_6, window_bounds = array<i64: 1, 8>}, {transform_indices = @transform_7, window_bounds = array<i64: 8, 8>}]} {
    %c0 = arith.constant 0 : index
    %c0_0 = arith.constant 0 : index
    %0 = vector.load %arg1[%c0, %c0_0] : memref<8x16xf32, #tpu.memory_space<vmem>>, vector<8x16xf32>
    %1 = arith.truncf %0 : vector<8x16xf32> to vector<8x16xbf16>
    %c0_1 = arith.constant 0 : index
    %c0_2 = arith.constant 0 : index
    %2 = vector.load %arg2[%c0_1, %c0_2] : memref<16x128xbf16, #tpu.memory_space<vmem>>, vector<16x128xbf16>
    %cst = arith.constant dense<0.000000e+00> : vector<8x128xf32>
    %3 = tpu.matmul %1, %2, %cst {dimension_numbers = #tpu.dot_dimension_numbers<[1], [0], [0], [1], [0, 0, 1, 1], [], []>} : vector<8x16xbf16>, vector<16x128xbf16>, vector<8x128xf32> -> vector<8x128xf32>
    %c0_3 = arith.constant 0 : index
    %c0_4 = arith.constant 0 : index
    %4 = vector.load %arg3[%c0_3, %c0_4] : memref<1x128xf32, #tpu.memory_space<vmem>>, vector<1x128xf32>
    %5 = vector.broadcast %4 : vector<1x128xf32> to vector<8x128xf32>
    %6 = arith.addf %3, %5 : vector<8x128xf32>
    %cst_5 = arith.constant 0.000000e+00 : f32
    %7 = vector.broadcast %cst_5 : f32 to vector<8x128xf32>
    %8 = arith.maximumf %6, %7 : vector<8x128xf32>
    %9 = arith.truncf %8 : vector<8x128xf32> to vector<8x128xbf16>
    %c0_6 = arith.constant 0 : index
    %c0_7 = arith.constant 0 : index
    %10 = vector.load %arg4[%c0_6, %c0_7] : memref<128x128xbf16, #tpu.memory_space<vmem>>, vector<128x128xbf16>
    %cst_8 = arith.constant dense<0.000000e+00> : vector<8x128xf32>
    %11 = tpu.matmul %9, %10, %cst_8 {dimension_numbers = #tpu.dot_dimension_numbers<[1], [0], [0], [1], [0, 0, 1, 1], [], []>} : vector<8x128xbf16>, vector<128x128xbf16>, vector<8x128xf32> -> vector<8x128xf32>
    %c0_9 = arith.constant 0 : index
    %c0_10 = arith.constant 0 : index
    %12 = vector.load %arg5[%c0_9, %c0_10] : memref<1x128xf32, #tpu.memory_space<vmem>>, vector<1x128xf32>
    %13 = vector.broadcast %12 : vector<1x128xf32> to vector<8x128xf32>
    %14 = arith.addf %11, %13 : vector<8x128xf32>
    %cst_11 = arith.constant 0.000000e+00 : f32
    %15 = vector.broadcast %cst_11 : f32 to vector<8x128xf32>
    %16 = arith.maximumf %14, %15 : vector<8x128xf32>
    %17 = arith.truncf %16 : vector<8x128xf32> to vector<8x128xbf16>
    %c0_12 = arith.constant 0 : index
    %c0_13 = arith.constant 0 : index
    %18 = vector.load %arg6[%c0_12, %c0_13] : memref<128x8xbf16, #tpu.memory_space<vmem>>, vector<128x8xbf16>
    %cst_14 = arith.constant dense<0.000000e+00> : vector<8x8xf32>
    %19 = tpu.matmul %17, %18, %cst_14 {dimension_numbers = #tpu.dot_dimension_numbers<[1], [0], [0], [1], [0, 0, 1, 1], [], []>} : vector<8x128xbf16>, vector<128x8xbf16>, vector<8x8xf32> -> vector<8x8xf32>
    %c0_15 = arith.constant 0 : index
    %c0_16 = arith.constant 0 : index
    %20 = vector.load %arg7[%c0_15, %c0_16] : memref<1x8xf32, #tpu.memory_space<vmem>>, vector<1x8xf32>
    %21 = vector.broadcast %20 : vector<1x8xf32> to vector<8x8xf32>
    %22 = arith.addf %19, %21 : vector<8x8xf32>
    %23 = math.tanh %22 : vector<8x8xf32>
    %cst_17 = arith.constant 1.000000e+00 : f32
    %24 = vector.broadcast %cst_17 : f32 to vector<8x8xf32>
    %25 = arith.mulf %24, %23 : vector<8x8xf32>
    %c0_18 = arith.constant 0 : index
    %c0_19 = arith.constant 0 : index
    %26 = vector.load %arg8[%c0_18, %c0_19] : memref<8x8xf32, #tpu.memory_space<vmem>>, vector<8x8xf32>
    tpu.vector_store %arg8[%c0_18, %c0_19], %25 {strides = array<i32>} : memref<8x8xf32, #tpu.memory_space<vmem>>, vector<8x8xf32>,
    return
  }
  func.func @transform_0(%arg0: i32) -> (i32, i32) {
    %c0_i32 = arith.constant 0 : i32
    %c0_i32_0 = arith.constant 0 : i32
    return %arg0, %c0_i32 : i32, i32
  }
  func.func @transform_1(%arg0: i32) -> (i32, i32) {
    %c0_i32 = arith.constant 0 : i32
    %c0_i32_0 = arith.constant 0 : i32
    %c0_i32_1 = arith.constant 0 : i32
    return %c0_i32, %c0_i32_0 : i32, i32
  }
  func.func @transform_2(%arg0: i32) -> (i32, i32) {
    %c0_i32 = arith.constant 0 : i32
    %c0_i32_0 = arith.constant 0 : i32
    %c0_i32_1 = arith.constant 0 : i32
    return %c0_i32, %c0_i32_0 : i32, i32
  }
  func.func @transform_3(%arg0: i32) -> (i32, i32) {
    %c0_i32 = arith.constant 0 : i32
    %c0_i32_0 = arith.constant 0 : i32
    %c0_i32_1 = arith.constant 0 : i32
    return %c0_i32, %c0_i32_0 : i32, i32
  }
  func.func @transform_4(%arg0: i32) -> (i32, i32) {
    %c0_i32 = arith.constant 0 : i32
    %c0_i32_0 = arith.constant 0 : i32
    %c0_i32_1 = arith.constant 0 : i32
    return %c0_i32, %c0_i32_0 : i32, i32
  }
  func.func @transform_5(%arg0: i32) -> (i32, i32) {
    %c0_i32 = arith.constant 0 : i32
    %c0_i32_0 = arith.constant 0 : i32
    %c0_i32_1 = arith.constant 0 : i32
    return %c0_i32, %c0_i32_0 : i32, i32
  }
  func.func @transform_6(%arg0: i32) -> (i32, i32) {
    %c0_i32 = arith.constant 0 : i32
    %c0_i32_0 = arith.constant 0 : i32
    %c0_i32_1 = arith.constant 0 : i32
    return %c0_i32, %c0_i32_0 : i32, i32
  }
  func.func @transform_7(%arg0: i32) -> (i32, i32) {
    %c0_i32 = arith.constant 0 : i32
    %c0_i32_0 = arith.constant 0 : i32
    return %arg0, %c0_i32 : i32, i32
  }
}

</mosaic_0001>

<bundles_post_ra>
// kernel: tpu_custom_call.1
= control target key start
LH: loop header
LB: loop body
LE: loop exit
PB: predicated region body
PF: predicated region fallthrough
CT: control target
= control target key end

     0   :  { %12 = vsyncpa [#allocation3], 0  ;;  %s561_s0 = inlined_call_operand.hbm [shape: f32[8,16], index: 0, kind: input, shape index: {}]   ;;  %s562_s1 = inlined_call_operand.hbm [shape: bf16[16,128], index: 1, kind: input, shape index: {}]   ;;  %s563_s2 = inlined_call_operand.vmem [shape: f32[1,128], index: 2, kind: input, shape index: {}]   ;;  %s564_s3 = inlined_call_operand.vmem [shape: bf16[128,128], index: 3, kind: input, shape index: {}]   ;;  %s565_s4 = inlined_call_operand.vmem [shape: f32[1,128], index: 4, kind: input, shape index: {}]   ;;  %s566_s5 = inlined_call_operand.vmem [shape: bf16[128,8], index: 5, kind: input, shape index: {}]   ;;  %s567_s6 = inlined_call_operand.vmem [shape: f32[1,8], index: 6, kind: input, shape index: {}]   ;;  %s568_s7 = inlined_call_operand.hbm [shape: f32[8,8], index: 7, kind: output, shape index: {}]  }
   0x1   :  { %13 = vsyncpa [#allocation6], 0 }
   0x2   :  { %14 = vsyncpa [#allocation4], 0  ;;  %s20_s26 = sshll.u32 %s561_s0, 4  ;;  %s450_s27 = smov [#allocation2]   ;;  %s21_s26 = int_to_ptr.hbm [resolvable:$true] %s20_s26 }
   0x3   :  { %s22_s28 = sshll.u32 %s450_s27, 4  ;;  %s30_s8 = sshll.u32 %s562_s1, 4  ;;  %s23_s28 = int_to_ptr.vmem [resolvable:$true] %s22_s28  ;;  %s31_s8 = int_to_ptr.hbm [resolvable:$true] %s30_s8 }
   0x4   :  { %25 = dma.hbm_to_vmem [thread:$0]  %s21_s26, 128, %s23_s28, [#allocation3]  }
   0x5   :  { %s451_s9 = smov [#allocation5]   ;;  %s452_s11 = smov 64  }
   0x6   :  { %s32_s10 = sshll.u32 %s451_s9, 4  ;;  %s453_s12 = smov 4   ;;  %s33_s10 = int_to_ptr.vmem [resolvable:$true] %s32_s10 }
   0x7   :  { %38 = dma.hbm_to_vmem [thread:$0]  %s31_s8, 128, %s33_s10, [#allocation6], %s452_s11, %s452_s11, %s453_s12  }
   0x8   :  { %444 = dma.done.wait [#allocation3], 128  }
   0x9   :  { %445 = vsyncadd [#allocation3], 4294967168 }
   0xa   :  { %446 = dma.done.wait [#allocation6], 128  }
   0xb   :  { %447 = vsyncadd [#allocation6], 4294967168  ;;  %v345_v0 = vld [vmem:[#allocation5] sm:$0xff]  ;;  %v58_v1 = vld [vmem:[#allocation2] sm:$0xff]  ;;  %vm72_vm0 = vcmask 130048   ;;  %s454_s22 = smov [#allocation7]  }
   0xc   :  { %v353_v2 = vld [vmem:[%s564_s3 + $0x38] sm:$0xff]  ;;  %v59_v3 = vpack.c.bf16 %v58_v1, %v58_v1  ;;  %83 = vmatpush.bf16.msra.mxu0 %v345_v0  ;;  %v352_v4 = vld [vmem:[%s564_s3 + $0x30] sm:$0xff]  ;;  %v351_v5 = vld [vmem:[%s564_s3 + $0x28] sm:$0xff]  ;;  %s265_s25 = sshll.u32 %s568_s7, 4  ;;  %vm256_vm1 = vcmask 64512   ;;  %s266_s25 = int_to_ptr.hbm [resolvable:$true] %s265_s25 }
   0xd   :  { %159 = vmatpush.bf16.msra.mxu1 %v353_v2  ;;  %v350_v6 = vld [vmem:[%s564_s3 + $0x20] sm:$0xff]  ;;  %v349_v7 = vld [vmem:[%s564_s3 + $0x18] sm:$0xff]  ;;  %v348_v8 = vld [vmem:[%s564_s3 + $0x10] sm:$0xff] }
   0xe   :  { %v347_v9 = vld [vmem:[%s564_s3 + $0x8] sm:$0xff]  ;;  %v346_v10 = vld [vmem:[%s564_s3] sm:$0xff]  ;;  %v361_v11 = vld [vmem:[%s566_s5 + $0x38] sm:$0xff] }
   0xf   :  { %280 = vmatmul.msk.bf16.vlgmr.msra.gmra.mxu0 %vm72_vm0, %v59_v3  ;;  %242 = vmatpush.bf16.msra.mxu2 %v361_v11  ;;  %v360_v12 = vld [vmem:[%s566_s5 + $0x30] sm:$0xff]  ;;  %v359_v13 = vld [vmem:[%s566_s5 + $0x28] sm:$0xff]  ;;  %v358_v14 = vld [vmem:[%s566_s5 + $0x20] sm:$0xff] }
  0x10   :  { %v357_v15 = vld [vmem:[%s566_s5 + $0x18] sm:$0xff]  ;;  %v356_v16 = vld [vmem:[%s566_s5 + $0x10] sm:$0xff]  ;;  %v367_v17 = vld [vmem:[%s563_s2] ss:$0 sm:$0xff] }
  0x11   :  { %160 = vmatpush.bf16.msra.mxu1 %v352_v4  ;;  %v355_v23 = vld [vmem:[%s566_s5 + $0x8] sm:$0xff]  ;;  %v354_v24 = vld [vmem:[%s566_s5] sm:$0xff]  ;;  %s263_s5 = sshll.u32 %s454_s22, 4  ;;  %s264_s5 = int_to_ptr.vmem [resolvable:$true] %s263_s5 }
  0x12   :  { %v368_v25 = vld [vmem:[%s565_s4] ss:$0 sm:$0xff] }
  0x13   :  { %243 = vmatpush.bf16.msra.mxu2 %v360_v12  ;;  %v369_v31 = vld [vmem:[%s567_s6] ss:$0 sm:$0xff] }
  0x15   :  { %161 = vmatpush.bf16.msra.mxu1 %v351_v5 }
  0x17   :  { %244 = vmatpush.bf16.msra.mxu2 %v359_v13 }
  0x19   :  { %162 = vmatpush.bf16.msra.mxu1 %v350_v6 }
  0x1b   :  { %245 = vmatpush.bf16.msra.mxu2 %v358_v14 }
  0x1d   :  { %163 = vmatpush.bf16.msra.mxu1 %v349_v7 }
  0x1f   :  { %246 = vmatpush.bf16.msra.mxu2 %v357_v15 }
  0x21   :  { %164 = vmatpush.bf16.msra.mxu1 %v348_v8 }
  0x23   :  { %247 = vmatpush.bf16.msra.mxu2 %v356_v16 }
  0x25   :  { %165 = vmatpush.bf16.msra.mxu1 %v347_v9 }
  0x27   :  { %248 = vmatpush.bf16.msra.mxu2 %v355_v23 }
  0x29   :  { %166 = vmatpush.bf16.msra.mxu1 %v346_v10 }
  0x2b   :  { %249 = vmatpush.bf16.msra.mxu2 %v354_v24 }
  0x8c   :  { %v85_v18 = vpop.f32.mrf.mxu0 }
  0x8d   :  { %v86_v19 = vadd.f32 %v367_v17, %v85_v18 }
  0x8f   :  { %v89_v20 = vmax.f32 %v86_v19, 0.0 }
  0x91   :  { %v90_v21 = vpack.c.bf16 %v89_v20, %v89_v20 }
  0x93   :  { %167 = vmatmul.bf16.vlgmr.msra.gmra.mxu1 %v90_v21 }
  0x94   :  { %v87_v22 = vpop.f32.mrf.mxu0 }
 0x110   :  { %v168_v26 = vpop.f32.mrf.mxu1 }
 0x111   :  { %v169_v27 = vadd.f32 %v368_v25, %v168_v26 }
 0x113   :  { %v172_v28 = vmax.f32 %v169_v27, 0.0 }
 0x115   :  { %v173_v29 = vpack.c.bf16 %v172_v28, %v172_v28 }
 0x117   :  { %250 = vmatmul.bf16.vlgmr.msra.gmra.mxu2 %v173_v29 }
 0x118   :  { %v170_v30 = vpop.f32.mrf.mxu1 }
 0x19a   :  { %v251_v32 = vpop.f32.mrf.mxu2 }
 0x19b   :  { %v252_v33 = vadd.f32 %v369_v31, %v251_v32 }
 0x19d   :  { %370 = vtanh.f32 %v252_v33 }
 0x1a2   :  { %v253_v34 = vpop.f32.mrf.mxu2 }
 0x1a3   :  { %v371_v35 = vpop.eup %370 }
 0x1a4   :  { %257 = vst.msk [vmem:[#allocation7] sm:$0xff] %vm256_vm1, %v371_v35 }
 0x1a5   :  { %268 = dma.vmem_to_hbm [thread:$0]  %s264_s5, 128, %s266_s25, [#allocation4]  }
 0x1a6   :  { %448 = dma.done.wait [#allocation4], 128  }
 0x1a7   :  { %449 = vsyncadd [#allocation4], 4294967168 }
 0x1a8   :  { %273 = vsyncpa [#allocation3], 1 }
 0x1a9   :  { %274 = vsyncpa [#allocation6], 1 }
 0x1aa   :  { %275 = vsyncpa [#allocation4], 1 }

</bundles_post_ra>
